<compile_context>
chip_gen: v6e
topology: v6e:2x2x1
jax: 0.10.0
libtpu: 0.0.40
codegen_flags: <defaults>
</compile_context>

<pallas_src>
import functools
import math

import jax
import jax.numpy as jnp
from jax import lax
from jax.experimental import pallas as pl
from jax.experimental.pallas import tpu as pltpu


# ----------------------------- helpers ---------------------------------------

def _round_up(x, m):
    return ((x + m - 1) // m) * m


def _pick_tm(M, want):
    """Row tile: multiple of 8 (sublane), capped by the (rounded-up) problem size."""
    want = max(8, _round_up(want, 8))
    return min(_round_up(M, 8), want)


def _pad_rows(x2, tm):
    M = x2.shape[0]
    Mp = _round_up(M, tm)
    if Mp != M:
        x2 = jnp.pad(x2, ((0, Mp - M), (0, 0)))
    return x2, Mp


def _vmem_limit(nbytes):
    # Resident weights + double-buffered tiles + headroom; clamp into a range that
    # is safe on v5e/v6e (128 MiB physical) and v7x (64 MiB physical).
    return int(min(64 << 20, max(32 << 20, 2 * nbytes + (4 << 20))))


def _compiler_params(semantics, nbytes):
    return pltpu.CompilerParams(
        dimension_semantics=semantics,
        vmem_limit_bytes=_vmem_limit(nbytes),
    )


# --------------------------- generic linear ----------------------------------

def _linear_kernel(x_ref, w_ref, b_ref, o_ref):
    acc = jnp.dot(x_ref[...], w_ref[...], preferred_element_type=jnp.float32)
    o_ref[...] = (acc + b_ref[...]).astype(o_ref.dtype)


def linear_rows(x2, w, b, *, tm=256, compute_dtype=None, out_dtype=None):
    """(M, Din) @ (Din, Dout) + b, row tiled; weight block is VMEM-resident."""
    M, Din = x2.shape
    Dout = w.shape[1]
    out_dtype = out_dtype or x2.dtype
    if compute_dtype is not None:                 # e.g. bf16 MXU operands
        x2 = x2.astype(compute_dtype)
        w = w.astype(compute_dtype)
    b2 = b.reshape(1, Dout).astype(jnp.float32)

    tm = _pick_tm(M, tm)
    xp, Mp = _pad_rows(x2, tm)

    itemsize = xp.dtype.itemsize
    nbytes = (tm * Din + Din * Dout) * itemsize + Dout * 4 + tm * Dout * 4
    bytes_accessed = int(Mp * Din * itemsize + Din * Dout * itemsize
                         + Mp * Dout * jnp.dtype(out_dtype).itemsize)

    out = pl.pallas_call(
        _linear_kernel,
        out_shape=jax.ShapeDtypeStruct((Mp, Dout), out_dtype),
        grid_spec=pltpu.PrefetchScalarGridSpec(
            num_scalar_prefetch=0,
            grid=(Mp // tm,),
            in_specs=[
                pl.BlockSpec((tm, Din), lambda i: (i, 0)),     # x rows
                pl.BlockSpec((Din, Dout), lambda i: (0, 0)),   # W (resident)
                pl.BlockSpec((1, Dout), lambda i: (0, 0)),     # b
            ],
            out_specs=pl.BlockSpec((tm, Dout), lambda i: (i, 0)),
        ),
        compiler_params=_compiler_params(("parallel",), nbytes),
        cost_estimate=pl.CostEstimate(flops=2 * Mp * Din * Dout,
                                      transcendentals=0,
                                      bytes_accessed=bytes_accessed),
    )(xp, w, b2)
    return out[:M]


# --------------------------- multi-head attention -----------------------------

def _mha_kernel(q_ref, k_ref, v_ref, m_ref, o_ref, *, scale):
    # q/k/v refs: (1, 1, S, d_k); mask ref: (1, 1, S)
    q = q_ref[0, 0]
    k = k_ref[0, 0]
    v = v_ref[0, 0]
    # scores = q @ k.T / sqrt(d_k)
    scores = lax.dot_general(q, k, (((1,), (1,)), ((), ())),
                             preferred_element_type=jnp.float32) * scale
    mask = m_ref[0]                                   # (1, S) broadcast over queries
    scores = jnp.where(mask == 0.0, jnp.float32(-1e9), scores)
    scores = scores - jnp.max(scores, axis=-1, keepdims=True)
    p = jnp.exp(scores)
    p = p / jnp.sum(p, axis=-1, keepdims=True)
    # TODO(synk): training-mode attention dropout would need pltpu.prng_* here.
    out = jnp.dot(p.astype(v.dtype), v, preferred_element_type=jnp.float32)
    o_ref[0, 0] = out.astype(o_ref.dtype)


def multi_head_attention(Q, K, V, mask, *, heads):
    B, S, D = Q.shape
    d_k = D // heads
    scale = 1.0 / math.sqrt(d_k)

    def split_heads(t):
        return t.reshape(B, S, heads, d_k).transpose(0, 2, 1, 3)

    Qh, Kh, Vh = split_heads(Q), split_heads(K), split_heads(V)
    mask3 = mask.reshape(B, 1, S).astype(jnp.float32)

    nbytes = (4 * S * d_k + S * S) * 4 + S * 4
    kern = functools.partial(_mha_kernel, scale=scale)
    outh = pl.pallas_call(
        kern,
        out_shape=jax.ShapeDtypeStruct((B, heads, S, d_k), Q.dtype),
        grid_spec=pltpu.PrefetchScalarGridSpec(
            num_scalar_prefetch=0,
            grid=(B, heads),
            in_specs=[
                pl.BlockSpec((1, 1, S, d_k), lambda b, h: (b, h, 0, 0)),
                pl.BlockSpec((1, 1, S, d_k), lambda b, h: (b, h, 0, 0)),
                pl.BlockSpec((1, 1, S, d_k), lambda b, h: (b, h, 0, 0)),
                pl.BlockSpec((1, 1, S), lambda b, h: (b, 0, 0)),
            ],
            out_specs=pl.BlockSpec((1, 1, S, d_k), lambda b, h: (b, h, 0, 0)),
        ),
        compiler_params=_compiler_params(("parallel", "parallel"), nbytes),
    )(Qh, Kh, Vh, mask3)
    return outh.transpose(0, 2, 1, 3).reshape(B, S, D)


# --------------------------- positionwise FFN ---------------------------------

def _ffn_kernel(x_ref, w1_ref, b1_ref, w2_ref, b2_ref, o_ref, *, n_chunks, kf):
    x = x_ref[...]
    tm = x.shape[0]
    d_out = o_ref.shape[-1]

    def body(c, acc):
        off = pl.multiple_of(c * kf, kf)
        h = jnp.dot(x, w1_ref[:, pl.ds(off, kf)],
                    preferred_element_type=jnp.float32)
        h = jnp.maximum(h + b1_ref[:, pl.ds(off, kf)], 0.0)
        # MXU operands stay in the compute dtype (bf16 downcast of the ReLU
        # activations when compute_dtype=bf16); accumulation stays f32.
        h = h.astype(x.dtype)
        return acc + jnp.dot(h, w2_ref[pl.ds(off, kf), :],
                             preferred_element_type=jnp.float32)

    acc = lax.fori_loop(0, n_chunks, body,
                        jnp.zeros((tm, d_out), jnp.float32), unroll=True)
    # TODO(synk): training-mode dropout would need pltpu.prng_seed/prng_random_bits;
    # this matches eval()/inference semantics (dropout = identity).
    o_ref[...] = (acc + b2_ref[...]).astype(o_ref.dtype)


def positionwise_ffn(x2, w1, b1, w2, b2, *, tm=256, kf=512,
                     compute_dtype=None, out_dtype=None):
    """x2: (M, d_model) -> (M, d_model); FFN(x) = relu(x@W1+b1)@W2+b2."""
    M, d_model = x2.shape
    d_ff = w1.shape[1]
    out_dtype = out_dtype or x2.dtype
    if compute_dtype is not None:
        x2 = x2.astype(compute_dtype)
        w1 = w1.astype(compute_dtype)
        w2 = w2.astype(compute_dtype)
    b1_2d = b1.reshape(1, d_ff).astype(jnp.float32)
    b2_2d = b2.reshape(1, d_model).astype(jnp.float32)

    tm = _pick_tm(M, tm)
    xp, Mp = _pad_rows(x2, tm)

    # Chunk d_ff so the (tm, d_ff) intermediate never materializes whole.
    if kf >= d_ff or d_ff % kf != 0:
        kf = d_ff
    n_chunks = d_ff // kf

    itemsize = xp.dtype.itemsize
    nbytes = ((d_model * d_ff + d_ff * d_model) * w1.dtype.itemsize
              + (tm * d_model) * itemsize + (tm * kf + tm * d_model) * 4
              + (d_ff + d_model) * 4)
    bytes_accessed = int(Mp * d_model * itemsize
                         + 2 * d_model * d_ff * w1.dtype.itemsize
                         + Mp * d_model * jnp.dtype(out_dtype).itemsize)

    kern = functools.partial(_ffn_kernel, n_chunks=n_chunks, kf=kf)
    out = pl.pallas_call(
        kern,
        out_shape=jax.ShapeDtypeStruct((Mp, d_model), out_dtype),
        grid_spec=pltpu.PrefetchScalarGridSpec(
            num_scalar_prefetch=0,
            grid=(Mp // tm,),
            in_specs=[
                pl.BlockSpec((tm, d_model), lambda i: (i, 0)),     # x rows
                pl.BlockSpec((d_model, d_ff), lambda i: (0, 0)),   # W1 (resident)
                pl.BlockSpec((1, d_ff), lambda i: (0, 0)),         # b1
                pl.BlockSpec((d_ff, d_model), lambda i: (0, 0)),   # W2 (resident)
                pl.BlockSpec((1, d_model), lambda i: (0, 0)),      # b2
            ],
            out_specs=pl.BlockSpec((tm, d_model), lambda i: (i, 0)),
        ),
        compiler_params=_compiler_params(("parallel",), nbytes),
        cost_estimate=pl.CostEstimate(flops=4 * Mp * d_model * d_ff,
                                      transcendentals=0,
                                      bytes_accessed=bytes_accessed),
    )(xp, w1, b1_2d, w2, b2_2d)
    return out[:M]


# --------------------------- residual + LayerNorm ------------------------------

def _add_ln_kernel(x_ref, y_ref, g_ref, b_ref, o_ref, *, eps):
    s = x_ref[...].astype(jnp.float32) + y_ref[...].astype(jnp.float32)
    mean = jnp.mean(s, axis=-1, keepdims=True)
    c = s - mean
    var = jnp.mean(c * c, axis=-1, keepdims=True)
    n = c * lax.rsqrt(var + eps)
    o_ref[...] = (n * g_ref[...] + b_ref[...]).astype(o_ref.dtype)


def add_layernorm(x2, y2, gamma, beta, *, tm=256, eps=1e-5):
    M, D = x2.shape
    tm = _pick_tm(M, tm)
    xp, Mp = _pad_rows(x2, tm)
    yp, _ = _pad_rows(y2, tm)
    g2 = gamma.reshape(1, D).astype(jnp.float32)
    b2 = beta.reshape(1, D).astype(jnp.float32)

    kern = functools.partial(_add_ln_kernel, eps=eps)
    out = pl.pallas_call(
        kern,
        out_shape=jax.ShapeDtypeStruct((Mp, D), x2.dtype),
        grid_spec=pltpu.PrefetchScalarGridSpec(
            num_scalar_prefetch=0,
            grid=(Mp // tm,),
            in_specs=[
                pl.BlockSpec((tm, D), lambda i: (i, 0)),
                pl.BlockSpec((tm, D), lambda i: (i, 0)),
                pl.BlockSpec((1, D), lambda i: (0, 0)),
                pl.BlockSpec((1, D), lambda i: (0, 0)),
            ],
            out_specs=pl.BlockSpec((tm, D), lambda i: (i, 0)),
        ),
        compiler_params=_compiler_params(("parallel",), 6 * tm * D * 4),
    )(xp, yp, g2, b2)
    return out[:M]


# --------------------------- full encoder layer --------------------------------

def encoder_layer(src, src_mask, params, *, heads, tm=256, kf=512,
                  compute_dtype=None):
    """src: (B, S, d_model); src_mask: (B, S) with 1=keep, 0=mask."""
    B, S, D = src.shape
    x2 = src.reshape(B * S, D)

    # Fused QKV projection (one weight-resident matmul instead of three).
    w_qkv = jnp.concatenate([params["wq"], params["wk"], params["wv"]], axis=1)
    b_qkv = jnp.concatenate([params["bq"], params["bk"], params["bv"]], axis=0)
    qkv = linear_rows(x2, w_qkv, b_qkv, tm=tm, compute_dtype=compute_dtype)
    Q, K, V = jnp.split(qkv.reshape(B, S, 3 * D), 3, axis=-1)

    attn = multi_head_attention(Q, K, V, src_mask, heads=heads)
    proj = linear_rows(attn.reshape(B * S, D), params["wo"], params["bo"],
                       tm=tm, compute_dtype=compute_dtype)
    src1 = add_layernorm(x2, proj, params["g1"], params["beta1"], tm=tm)

    ff = positionwise_ffn(src1, params["w1"], params["b1"],
                          params["w2"], params["b2"],
                          tm=tm, kf=kf, compute_dtype=compute_dtype)
    out2 = add_layernorm(src1, ff, params["g2"], params["beta2"], tm=tm)
    return out2.reshape(B, S, D)


# ------------------------------------ demo --------------------------------------

if __name__ == "__main__":
    B, S, D, H, d_ff = 2, 8, 32, 4, 64
    d_k = D // H

    key = jax.random.PRNGKey(0)
    keys = jax.random.split(key, 16)

    def w(k, shape, scale=0.1):
        return jax.random.normal(k, shape, dtype=jnp.float32) * scale

    src = jax.random.normal(keys[0], (B, S, D), dtype=jnp.float32)
    src_mask = jnp.ones((B, S), dtype=jnp.float32).at[1, S - 2:].set(0.0)

    params = dict(
        # nn.Linear weights stored transposed: (in, out), so kernel does x @ W + b.
        wq=w(keys[1], (D, D)), bq=w(keys[2], (D,)),
        wk=w(keys[3], (D, D)), bk=w(keys[4], (D,)),
        wv=w(keys[5], (D, D)), bv=w(keys[6], (D,)),
        wo=w(keys[7], (D, D)), bo=w(keys[8], (D,)),
        w1=w(keys[9], (D, d_ff)), b1=w(keys[10], (d_ff,)),
        w2=w(keys[11], (d_ff, D)), b2=w(keys[12], (D,)),
        g1=1.0 + w(keys[13], (D,)), beta1=w(keys[14], (D,)),
        g2=1.0 + w(keys[15], (D,)), beta2=w(keys[0], (D,)) * 0.0 + 0.05,
    )

    out = encoder_layer(src, src_mask, params, heads=H)
    out = jax.block_until_ready(out)

    # ---------- pure-JAX reference of EncoderLayer.forward (eval mode) ----------
    def ref_encoder_layer(x, mask, p):
        def lin(t, ww, bb):
            return t @ ww + bb

        def ln(t, g, b):
            m = t.mean(-1, keepdims=True)
            v = ((t - m) ** 2).mean(-1, keepdims=True)
            return (t - m) / jnp.sqrt(v + 1e-5) * g + b

        Q, K, V = lin(x, p["wq"], p["bq"]), lin(x, p["wk"], p["bk"]), lin(x, p["wv"], p["bv"])

        def sh(t):
            return t.reshape(B, S, H, d_k).transpose(0, 2, 1, 3)

        Qh, Kh, Vh = sh(Q), sh(K), sh(V)
        scores = jnp.einsum("bhqd,bhkd->bhqk", Qh, Kh) / math.sqrt(d_k)
        scores = jnp.where(mask[:, None, None, :] == 0, -1e9, scores)
        attn = jax.nn.softmax(scores, axis=-1)
        y = jnp.einsum("bhqk,bhkd->bhqd", attn, Vh)
        y = y.transpose(0, 2, 1, 3).reshape(B, S, D)
        y = lin(y, p["wo"], p["bo"])
        s1 = ln(x + y, p["g1"], p["beta1"])
        ffo = jnp.maximum(s1 @ p["w1"] + p["b1"], 0.0) @ p["w2"] + p["b2"]
        return ln(s1 + ffo, p["g2"], p["beta2"])

    ref = ref_encoder_layer(src, src_mask, params)
    assert out.shape == (B, S, D)
    assert jnp.allclose(out, ref, atol=1e-4, rtol=1e-4), (
        float(jnp.max(jnp.abs(out - ref))))

    print("KERNEL_OK")
</pallas_src>

<mosaic_0001>
module attributes {stable_mosaic.version = 11 : i64} {
  func.func @_linear_kernel(%arg0: i32, %arg1: memref<16x32xf32, #tpu.memory_space<vmem>>, %arg2: memref<32x96xf32, #tpu.memory_space<vmem>>, %arg3: memref<1x96xf32, #tpu.memory_space<vmem>>, %arg4: memref<16x96xf32, #tpu.memory_space<vmem>>) attributes {dimension_semantics = [#tpu.dimension_semantics<parallel>], iteration_bounds = array<i64: 1>, scalar_prefetch = 0 : i64, scratch_operands = 0 : i64, tpu.core_type = #tpu.core_type<tc>, window_params = [{transform_indices = @transform_0, window_bounds = array<i64: 16, 32>}, {pipeline_mode = #tpu.pipeline_mode<synchronous>, transform_indices = @transform_1, window_bounds = array<i64: 32, 96>}, {pipeline_mode = #tpu.pipeline_mode<synchronous>, transform_indices = @transform_2, window_bounds = array<i64: 1, 96>}, {transform_indices = @transform_3, window_bounds = array<i64: 16, 96>}]} {
    %c0 = arith.constant 0 : index
    %c0_0 = arith.constant 0 : index
    %0 = vector.load %arg1[%c0, %c0_0] : memref<16x32xf32, #tpu.memory_space<vmem>>, vector<16x32xf32>
    %c0_1 = arith.constant 0 : index
    %c0_2 = arith.constant 0 : index
    %1 = vector.load %arg2[%c0_1, %c0_2] : memref<32x96xf32, #tpu.memory_space<vmem>>, vector<32x96xf32>
    %cst = arith.constant dense<0.000000e+00> : vector<16x96xf32>
    %2 = tpu.matmul %0, %1, %cst {dimension_numbers = #tpu.dot_dimension_numbers<[1], [0], [0], [1], [0, 0, 1, 1], [], []>} : vector<16x32xf32>, vector<32x96xf32>, vector<16x96xf32> -> vector<16x96xf32>
    %c0_3 = arith.constant 0 : index
    %c0_4 = arith.constant 0 : index
    %3 = vector.load %arg3[%c0_3, %c0_4] : memref<1x96xf32, #tpu.memory_space<vmem>>, vector<1x96xf32>
    %4 = vector.broadcast %3 : vector<1x96xf32> to vector<16x96xf32>
    %5 = arith.addf %2, %4 : vector<16x96xf32>
    %c0_5 = arith.constant 0 : index
    %c0_6 = arith.constant 0 : index
    %6 = vector.load %arg4[%c0_5, %c0_6] : memref<16x96xf32, #tpu.memory_space<vmem>>, vector<16x96xf32>
    tpu.vector_store %arg4[%c0_5, %c0_6], %5 {strides = array<i32>} : memref<16x96xf32, #tpu.memory_space<vmem>>, vector<16x96xf32>,
    return
  }
  func.func @transform_0(%arg0: i32) -> (i32, i32) {
    %c0_i32 = arith.constant 0 : i32
    %c0_i32_0 = arith.constant 0 : i32
    return %arg0, %c0_i32 : i32, i32
  }
  func.func @transform_1(%arg0: i32) -> (i32, i32) {
    %c0_i32 = arith.constant 0 : i32
    %c0_i32_0 = arith.constant 0 : i32
    %c0_i32_1 = arith.constant 0 : i32
    return %c0_i32, %c0_i32_0 : i32, i32
  }
  func.func @transform_2(%arg0: i32) -> (i32, i32) {
    %c0_i32 = arith.constant 0 : i32
    %c0_i32_0 = arith.constant 0 : i32
    %c0_i32_1 = arith.constant 0 : i32
    return %c0_i32, %c0_i32_0 : i32, i32
  }
  func.func @transform_3(%arg0: i32) -> (i32, i32) {
    %c0_i32 = arith.constant 0 : i32
    %c0_i32_0 = arith.constant 0 : i32
    return %arg0, %c0_i32 : i32, i32
  }
}

</mosaic_0001>

<bundles_post_ra>
// kernel: tpu_custom_call.1
= control target key start
LH: loop header
LB: loop body
LE: loop exit
PB: predicated region body
PF: predicated region fallthrough
CT: control target
= control target key end

     0   :  { %8 = vsyncpa [#allocation3], 0  ;;  %s298_s0 = inlined_call_operand.hbm [shape: f32[16,32], index: 0, kind: input, shape index: {}]   ;;  %s299_s1 = inlined_call_operand.hbm [shape: f32[32,96], index: 1, kind: input, shape index: {}]   ;;  %s300_s2 = inlined_call_operand.vmem [shape: f32[1,96], index: 2, kind: input, shape index: {}]   ;;  %s301_s3 = inlined_call_operand.hbm [shape: f32[16,96], index: 3, kind: output, shape index: {}]  }
   0x1   :  { %9 = vsyncpa [#allocation6], 0 }
   0x2   :  { %10 = vsyncpa [#allocation4], 0  ;;  %s250_s12 = smov [#allocation2]  }
   0x3   :  { %s16_s13 = sshll.u32 %s250_s12, 4  ;;  %s17_s13 = int_to_ptr.vmem [resolvable:$true] %s16_s13 }
   0x4   :  { %s192_s14 = scalar_lea.vmem %s17_s13, 256  ;;  %p197_p1 = scmp.lt.s32.totalorder %s17_s13, %s17_s13 }
   0x5   :  { %p193_p0 = scmp.ne.s32.totalorder %s17_s13, %s192_s14  ;;  %p198_p2 = scmp.lt.s32.totalorder %s192_s14, %s192_s14 }
   0x7   :  { %p199_p3 = por %p198_p2, %p197_p1 }
   0x9   :  { %p200_p4 = pnand %p199_p3, %p193_p0 }
   0xb   :  { %203 = shalt.err (!%p200_p4)
}
   0xc   :  { %s251_s15 = smov 128   ;;  %s252_s16 = smov 8  }
   0xd   :  { %22 = dma.hbm_to_vmem [thread:$0]  %s298_s0, 256, %s17_s13, [#allocation3], %s251_s15, %s251_s15, %s252_s16  }
   0xe   :  { %s253_s19 = smov [#allocation5]  }
   0xf   :  { %s28_s20 = sshll.u32 %s253_s19, 4  ;;  %s29_s20 = int_to_ptr.vmem [resolvable:$true] %s28_s20 }
  0x10   :  { %s212_s21 = scalar_lea.vmem %s29_s20, 512  ;;  %p217_p6 = scmp.lt.s32.totalorder %s29_s20, %s29_s20 }
  0x11   :  { %p213_p5 = scmp.ne.s32.totalorder %s29_s20, %s212_s21  ;;  %p218_p7 = scmp.lt.s32.totalorder %s212_s21, %s212_s21 }
  0x13   :  { %p219_p8 = por %p218_p7, %p217_p6 }
  0x15   :  { %p220_p9 = pnand %p219_p8, %p213_p5 }
  0x17   :  { %223 = shalt.err (!%p220_p9)
}
  0x18   :  { %34 = dma.hbm_to_vmem [thread:$0]  %s299_s1, 512, %s29_s20, [#allocation6], %s251_s15, %s251_s15, %s252_s16  }
  0x19   :  { %244 = dma.done.wait [#allocation3], 256  }
  0x1a   :  { %245 = vsyncadd [#allocation3], 4294967040 }
  0x1b   :  { %246 = dma.done.wait [#allocation6], 512  }
  0x1c   :  { %247 = vsyncadd [#allocation6], 4294966784  ;;  %vm56_vm0 = vcmask 261120   ;;  %v48_v0 = vld [vmem:[#allocation5 + $0x18] sm:$0xff]  ;;  %v47_v1 = vld [vmem:[#allocation5 + $0x10] sm:$0xff]  ;;  %vm138_vm1 = vcmask 785408  }
  0x1d   :  { %168 = vmatprep.subr.mxu0 %v48_v0  ;;  %v43_v2 = vld [vmem:[#allocation2] sm:$0xff]  ;;  %v46_v3 = vld [vmem:[#allocation5 + $0x8] sm:$0xff]  ;;  %v45_v4 = vld [vmem:[#allocation5] sm:$0xff]  ;;  %s254_s24 = smov [#allocation7]  }
  0x1e   :  { %169 = vmatpush3.msra.mxu0 %v48_v0  ;;  %176 = vmatprep.mubr.msk.f32.mxu0 %vm56_vm0, %v43_v2  ;;  %v44_v5 = vld [vmem:[#allocation2 + $0x8] sm:$0xff]  ;;  %v159_v6 = vld [vmem:[%s300_s2] ss:$0 sm:$0xff]  ;;  %s146_s25 = sshll.u32 %s254_s24, 4  ;;  %s147_s25 = int_to_ptr.vmem [resolvable:$true] %s146_s25 }
  0x1f   :  { %170 = vmatprep.subr.mxu0 %v47_v1  ;;  %s224_s26 = scalar_lea.vmem %s147_s25, 256  ;;  %p229_p11 = scmp.lt.s32.totalorder %s147_s25, %s147_s25 }
  0x20   :  { %171 = vmatpush3.msra.mxu0 %v47_v1  ;;  %p225_p10 = scmp.ne.s32.totalorder %s147_s25, %s224_s26  ;;  %p230_p12 = scmp.lt.s32.totalorder %s224_s26, %s224_s26 }
  0x21   :  { %172 = vmatprep.subr.mxu0 %v46_v3 }
  0x22   :  { %173 = vmatpush3.msra.mxu0 %v46_v3  ;;  %p231_p13 = por %p230_p12, %p229_p11 }
  0x23   :  { %174 = vmatprep.subr.mxu0 %v45_v4 }
  0x24   :  { %175 = vmatpush3.msra.mxu0 %v45_v4  ;;  %p232_p0 = pnand %p231_p13, %p225_p10 }
  0x25   :  { %177 = vmatmul.mubr.msk.f32.vlgmr.msra.gmra.mxu0 %vm56_vm0, %v44_v5 }
  0xe5   :  { %v178_v7 = vpop.f32.mrf.mxu0 }
  0xe6   :  { %v135_v8 = vadd.f32 %v178_v7, %v159_v6 }
  0xe7   :  { %v129_v9 = vpop.f32.mrf.mxu0 }
  0xe8   :  { %v130_v10 = vadd.f32 %v159_v6, %v129_v9  ;;  %140 = vst.msk [vmem:[#allocation7 + $0x8] sm:$0xff] %vm138_vm1, %v135_v8 }
  0xea   :  { %139 = vst.msk [vmem:[#allocation7] sm:$0xff] %vm138_vm1, %v130_v10 }
  0xeb   :  { %235 = shalt.err (!%p232_p0)
}
  0xec   :  { %152 = dma.vmem_to_hbm [thread:$0]  %s147_s25, 256, %s301_s3, [#allocation4], %s251_s15, %s251_s15, %s252_s16  }
  0xed   :  { %248 = dma.done.wait [#allocation4], 256  }
  0xee   :  { %249 = vsyncadd [#allocation4], 4294967040 }
  0xef   :  { %156 = vsyncpa [#allocation3], 1 }
  0xf0   :  { %157 = vsyncpa [#allocation6], 1 }
  0xf1   :  { %158 = vsyncpa [#allocation4], 1 }

</bundles_post_ra>
